<compile_context>
chip_gen: v7x
topology: tpu7x:2x2x1
jax: 0.10.0
libtpu: 0.0.40
codegen_flags: <defaults>
</compile_context>

<pallas_src>
import functools

import jax
import jax.numpy as jnp
from jax.experimental import pallas as pl
from jax.experimental.pallas import tpu as pltpu

HIDDEN_PAD = 128  # padded lane width for all hidden layers


def classifier_mlp_kernel(x_ref,
                          w1_ref, b1_ref,
                          w2_ref, b2_ref,
                          w3_ref, b3_ref,
                          w4_ref, b4_ref,
                          o_ref):
    """Fused 4-layer MLP (Linear+ReLU x3, Linear) on one (TB, F) batch tile.

    x arrives f32 and is cast to bf16 here (hidden under the pipeline DMA);
    all matmuls accumulate in f32; bias-add/ReLU in f32 (v5e-friendly).
    """
    x = x_ref[...].astype(jnp.bfloat16)                              # (TB, 64)

    h = jnp.dot(x, w1_ref[...], preferred_element_type=jnp.float32) + b1_ref[...]
    h = jnp.maximum(h, 0.0)

    h = jnp.dot(h.astype(jnp.bfloat16), w2_ref[...],
                preferred_element_type=jnp.float32) + b2_ref[...]
    h = jnp.maximum(h, 0.0)

    h = jnp.dot(h.astype(jnp.bfloat16), w3_ref[...],
                preferred_element_type=jnp.float32) + b3_ref[...]
    h = jnp.maximum(h, 0.0)

    out = jnp.dot(h.astype(jnp.bfloat16), w4_ref[...],
                  preferred_element_type=jnp.float32) + b4_ref[...]
    o_ref[...] = out.astype(o_ref.dtype)                             # (TB, OUT_PAD)


def _round_up(n, m):
    return ((n + m - 1) // m) * m


def _pad2(a, rows, cols):
    return jnp.pad(a, ((0, rows - a.shape[0]), (0, cols - a.shape[1])))


def prepare_params(params, *, out_pad=None):
    """One-time pad + bf16 cast of weights/biases (keep out of the forward path).

    params: dict of f32 weights/biases in (in, out) layout.
    out_pad: padded class width; default rounds num_classes up to a multiple
             of 8 (=> 16 for 10 classes).  Use 128 on v7x for a lane-dense store.
    """
    F = params["w1"].shape[0]
    num_classes = params["w4"].shape[1]
    HP = HIDDEN_PAD
    if out_pad is None:
        out_pad = _round_up(num_classes, 8)
    assert out_pad >= num_classes and out_pad % 8 == 0
    return {
        "w1": _pad2(params["w1"], F, HP).astype(jnp.bfloat16),     # (64, 128)
        "b1": _pad2(params["b1"], 1, HP).astype(jnp.float32),
        "w2": _pad2(params["w2"], HP, HP).astype(jnp.bfloat16),    # (128, 128)
        "b2": _pad2(params["b2"], 1, HP).astype(jnp.float32),
        "w3": _pad2(params["w3"], HP, HP).astype(jnp.bfloat16),    # (128, 128)
        "b3": _pad2(params["b3"], 1, HP).astype(jnp.float32),
        "w4": _pad2(params["w4"], HP, out_pad).astype(jnp.bfloat16),  # (128, OP)
        "b4": _pad2(params["b4"], 1, out_pad).astype(jnp.float32),
    }


@functools.partial(jax.jit, static_argnames=("num_classes", "block_batch"))
def classifier_forward(x, prep, *, num_classes, block_batch=2048):
    """x: (B, input_dim) float32. prep: output of prepare_params (padded/bf16)."""
    B, F = x.shape
    HP = HIDDEN_PAD
    OP = prep["w4"].shape[1]

    # Batch tile: multiple of 16 (bf16 sublane packing of the in-kernel cast),
    # large enough to amortize the ~0.35 us/step pipeline overhead.
    tb = max(16, (min(block_batch, _round_up(B, 16)) // 16) * 16)
    bp = _round_up(B, tb)
    if bp != B:
        x = jnp.pad(x, ((0, bp - B), (0, 0)))

    grid = (bp // tb,)

    def const_spec(shape):
        # Same block every step -> stays VMEM-resident across grid iterations.
        return pl.BlockSpec(shape, lambda i: (0, 0))

    out = pl.pallas_call(
        classifier_mlp_kernel,
        out_shape=jax.ShapeDtypeStruct((bp, OP), jnp.float32),
        grid=grid,
        in_specs=[
            pl.BlockSpec((tb, F), lambda i: (i, 0)),           # x tile, streamed f32
            const_spec((F, HP)), const_spec((1, HP)),          # layer 1
            const_spec((HP, HP)), const_spec((1, HP)),         # layer 2
            const_spec((HP, HP)), const_spec((1, HP)),         # layer 3
            const_spec((HP, OP)), const_spec((1, OP)),         # layer 4 (narrow N)
        ],
        out_specs=pl.BlockSpec((tb, OP), lambda i: (i, 0)),    # compact logits tile
        compiler_params=pltpu.CompilerParams(
            dimension_semantics=("parallel",),                 # 2-TC sharding on v7x
            vmem_limit_bytes=32 * 1024 * 1024,                 # safe on v5e/v6e/v7x
        ),
    )(x, prep["w1"], prep["b1"], prep["w2"], prep["b2"],
      prep["w3"], prep["b3"], prep["w4"], prep["b4"])

    return out[:B, :num_classes]


def init_params(key, input_dim=64, num_classes=10):
    """PyTorch-style Linear init (U(-1/sqrt(fan_in), 1/sqrt(fan_in))), (in, out) layout."""
    dims = [input_dim, 32, 16, 8, num_classes]
    params = {}
    for i in range(4):
        key, kw, kb = jax.random.split(key, 3)
        fan_in, fan_out = dims[i], dims[i + 1]
        bound = 1.0 / jnp.sqrt(fan_in)
        params[f"w{i + 1}"] = jax.random.uniform(
            kw, (fan_in, fan_out), jnp.float32, -bound, bound)
        params[f"b{i + 1}"] = jax.random.uniform(
            kb, (1, fan_out), jnp.float32, -bound, bound)
    return params


def reference_forward_f32(x, params):
    """Pure f32 reference (module semantics)."""
    hp = jax.lax.Precision.HIGHEST
    h = jnp.maximum(jnp.dot(x, params["w1"], precision=hp) + params["b1"], 0.0)
    h = jnp.maximum(jnp.dot(h, params["w2"], precision=hp) + params["b2"], 0.0)
    h = jnp.maximum(jnp.dot(h, params["w3"], precision=hp) + params["b3"], 0.0)
    return jnp.dot(h, params["w4"], precision=hp) + params["b4"]


def reference_forward_bf16(x, params):
    """Mirrors the kernel's numerics: bf16 operands, f32 accumulation/elementwise."""
    def dot(a, w):
        return jnp.dot(a.astype(jnp.bfloat16), w.astype(jnp.bfloat16),
                       preferred_element_type=jnp.float32)
    h = jnp.maximum(dot(x, params["w1"]) + params["b1"], 0.0)
    h = jnp.maximum(dot(h, params["w2"]) + params["b2"], 0.0)
    h = jnp.maximum(dot(h, params["w3"]) + params["b3"], 0.0)
    return dot(h, params["w4"]) + params["b4"]


if __name__ == "__main__":
    key = jax.random.PRNGKey(0)
    key, kx = jax.random.split(key)

    B, INPUT_DIM, NUM_CLASSES = 8, 64, 10
    # x plays the role of the VAE latents fed to the classifier head
    x = jax.random.normal(kx, (B, INPUT_DIM), dtype=jnp.float32)
    params = init_params(key, input_dim=INPUT_DIM, num_classes=NUM_CLASSES)

    # One-time parameter preparation (pad + bf16 cast), outside the forward path.
    prep = jax.tree_util.tree_map(jax.block_until_ready, prepare_params(params))

    logits = classifier_forward(x, prep, num_classes=NUM_CLASSES)
    logits = jax.block_until_ready(logits)
    assert logits.shape == (B, NUM_CLASSES)
    assert logits.dtype == jnp.float32

    # Numerics check against a reference with identical (bf16-in / f32-acc) precision.
    ref_bf16 = reference_forward_bf16(x, params)
    assert jnp.allclose(logits, ref_bf16, atol=1e-4, rtol=1e-4), (
        jnp.max(jnp.abs(logits - ref_bf16)))

    # Semantics check against the original module's f32 forward (bf16 tolerance).
    ref_f32 = reference_forward_f32(x, params)
    assert jnp.allclose(logits, ref_f32, atol=5e-2, rtol=5e-2), (
        jnp.max(jnp.abs(logits - ref_f32)))

    print("KERNEL_OK")
</pallas_src>

<mosaic_0001>
module attributes {stable_mosaic.version = 11 : i64} {
  func.func @classifier_mlp_kernel(%arg0: i32, %arg1: memref<16x64xf32, #tpu.memory_space<vmem>>, %arg2: memref<64x128xbf16, #tpu.memory_space<vmem>>, %arg3: memref<1x128xf32, #tpu.memory_space<vmem>>, %arg4: memref<128x128xbf16, #tpu.memory_space<vmem>>, %arg5: memref<1x128xf32, #tpu.memory_space<vmem>>, %arg6: memref<128x128xbf16, #tpu.memory_space<vmem>>, %arg7: memref<1x128xf32, #tpu.memory_space<vmem>>, %arg8: memref<128x16xbf16, #tpu.memory_space<vmem>>, %arg9: memref<1x16xf32, #tpu.memory_space<vmem>>, %arg10: memref<16x16xf32, #tpu.memory_space<vmem>>) attributes {dimension_semantics = [#tpu.dimension_semantics<parallel>], iteration_bounds = array<i64: 1>, scalar_prefetch = 0 : i64, scratch_operands = 0 : i64, tpu.core_type = #tpu.core_type<tc>, window_params = [{transform_indices = @transform_0, window_bounds = array<i64: 16, 64>}, {pipeline_mode = #tpu.pipeline_mode<synchronous>, transform_indices = @transform_1, window_bounds = array<i64: 64, 128>}, {pipeline_mode = #tpu.pipeline_mode<synchronous>, transform_indices = @transform_2, window_bounds = array<i64: 1, 128>}, {pipeline_mode = #tpu.pipeline_mode<synchronous>, transform_indices = @transform_3, window_bounds = array<i64: 128, 128>}, {pipeline_mode = #tpu.pipeline_mode<synchronous>, transform_indices = @transform_4, window_bounds = array<i64: 1, 128>}, {pipeline_mode = #tpu.pipeline_mode<synchronous>, transform_indices = @transform_5, window_bounds = array<i64: 128, 128>}, {pipeline_mode = #tpu.pipeline_mode<synchronous>, transform_indices = @transform_6, window_bounds = array<i64: 1, 128>}, {pipeline_mode = #tpu.pipeline_mode<synchronous>, transform_indices = @transform_7, window_bounds = array<i64: 128, 16>}, {pipeline_mode = #tpu.pipeline_mode<synchronous>, transform_indices = @transform_8, window_bounds = array<i64: 1, 16>}, {transform_indices = @transform_9, window_bounds = array<i64: 16, 16>}]} {
    %c0 = arith.constant 0 : index
    %c0_0 = arith.constant 0 : index
    %0 = vector.load %arg1[%c0, %c0_0] : memref<16x64xf32, #tpu.memory_space<vmem>>, vector<16x64xf32>
    %1 = arith.truncf %0 : vector<16x64xf32> to vector<16x64xbf16>
    %c0_1 = arith.constant 0 : index
    %c0_2 = arith.constant 0 : index
    %2 = vector.load %arg2[%c0_1, %c0_2] : memref<64x128xbf16, #tpu.memory_space<vmem>>, vector<64x128xbf16>
    %cst = arith.constant dense<0.000000e+00> : vector<16x128xf32>
    %3 = tpu.matmul %1, %2, %cst {dimension_numbers = #tpu.dot_dimension_numbers<[1], [0], [0], [1], [0, 0, 1, 1], [], []>} : vector<16x64xbf16>, vector<64x128xbf16>, vector<16x128xf32> -> vector<16x128xf32>
    %c0_3 = arith.constant 0 : index
    %c0_4 = arith.constant 0 : index
    %4 = vector.load %arg3[%c0_3, %c0_4] : memref<1x128xf32, #tpu.memory_space<vmem>>, vector<1x128xf32>
    %5 = vector.broadcast %4 : vector<1x128xf32> to vector<16x128xf32>
    %6 = arith.addf %3, %5 : vector<16x128xf32>
    %cst_5 = arith.constant 0.000000e+00 : f32
    %7 = vector.broadcast %cst_5 : f32 to vector<16x128xf32>
    %8 = arith.maximumf %6, %7 : vector<16x128xf32>
    %9 = arith.truncf %8 : vector<16x128xf32> to vector<16x128xbf16>
    %c0_6 = arith.constant 0 : index
    %c0_7 = arith.constant 0 : index
    %10 = vector.load %arg4[%c0_6, %c0_7] : memref<128x128xbf16, #tpu.memory_space<vmem>>, vector<128x128xbf16>
    %cst_8 = arith.constant dense<0.000000e+00> : vector<16x128xf32>
    %11 = tpu.matmul %9, %10, %cst_8 {dimension_numbers = #tpu.dot_dimension_numbers<[1], [0], [0], [1], [0, 0, 1, 1], [], []>} : vector<16x128xbf16>, vector<128x128xbf16>, vector<16x128xf32> -> vector<16x128xf32>
    %c0_9 = arith.constant 0 : index
    %c0_10 = arith.constant 0 : index
    %12 = vector.load %arg5[%c0_9, %c0_10] : memref<1x128xf32, #tpu.memory_space<vmem>>, vector<1x128xf32>
    %13 = vector.broadcast %12 : vector<1x128xf32> to vector<16x128xf32>
    %14 = arith.addf %11, %13 : vector<16x128xf32>
    %cst_11 = arith.constant 0.000000e+00 : f32
    %15 = vector.broadcast %cst_11 : f32 to vector<16x128xf32>
    %16 = arith.maximumf %14, %15 : vector<16x128xf32>
    %17 = arith.truncf %16 : vector<16x128xf32> to vector<16x128xbf16>
    %c0_12 = arith.constant 0 : index
    %c0_13 = arith.constant 0 : index
    %18 = vector.load %arg6[%c0_12, %c0_13] : memref<128x128xbf16, #tpu.memory_space<vmem>>, vector<128x128xbf16>
    %cst_14 = arith.constant dense<0.000000e+00> : vector<16x128xf32>
    %19 = tpu.matmul %17, %18, %cst_14 {dimension_numbers = #tpu.dot_dimension_numbers<[1], [0], [0], [1], [0, 0, 1, 1], [], []>} : vector<16x128xbf16>, vector<128x128xbf16>, vector<16x128xf32> -> vector<16x128xf32>
    %c0_15 = arith.constant 0 : index
    %c0_16 = arith.constant 0 : index
    %20 = vector.load %arg7[%c0_15, %c0_16] : memref<1x128xf32, #tpu.memory_space<vmem>>, vector<1x128xf32>
    %21 = vector.broadcast %20 : vector<1x128xf32> to vector<16x128xf32>
    %22 = arith.addf %19, %21 : vector<16x128xf32>
    %cst_17 = arith.constant 0.000000e+00 : f32
    %23 = vector.broadcast %cst_17 : f32 to vector<16x128xf32>
    %24 = arith.maximumf %22, %23 : vector<16x128xf32>
    %25 = arith.truncf %24 : vector<16x128xf32> to vector<16x128xbf16>
    %c0_18 = arith.constant 0 : index
    %c0_19 = arith.constant 0 : index
    %26 = vector.load %arg8[%c0_18, %c0_19] : memref<128x16xbf16, #tpu.memory_space<vmem>>, vector<128x16xbf16>
    %cst_20 = arith.constant dense<0.000000e+00> : vector<16x16xf32>
    %27 = tpu.matmul %25, %26, %cst_20 {dimension_numbers = #tpu.dot_dimension_numbers<[1], [0], [0], [1], [0, 0, 1, 1], [], []>} : vector<16x128xbf16>, vector<128x16xbf16>, vector<16x16xf32> -> vector<16x16xf32>
    %c0_21 = arith.constant 0 : index
    %c0_22 = arith.constant 0 : index
    %28 = vector.load %arg9[%c0_21, %c0_22] : memref<1x16xf32, #tpu.memory_space<vmem>>, vector<1x16xf32>
    %29 = vector.broadcast %28 : vector<1x16xf32> to vector<16x16xf32>
    %30 = arith.addf %27, %29 : vector<16x16xf32>
    %c0_23 = arith.constant 0 : index
    %c0_24 = arith.constant 0 : index
    %31 = vector.load %arg10[%c0_23, %c0_24] : memref<16x16xf32, #tpu.memory_space<vmem>>, vector<16x16xf32>
    tpu.vector_store %arg10[%c0_23, %c0_24], %30 {strides = array<i32>} : memref<16x16xf32, #tpu.memory_space<vmem>>, vector<16x16xf32>,
    return
  }
  func.func @transform_0(%arg0: i32) -> (i32, i32) {
    %c0_i32 = arith.constant 0 : i32
    %c0_i32_0 = arith.constant 0 : i32
    return %arg0, %c0_i32 : i32, i32
  }
  func.func @transform_1(%arg0: i32) -> (i32, i32) {
    %c0_i32 = arith.constant 0 : i32
    %c0_i32_0 = arith.constant 0 : i32
    %c0_i32_1 = arith.constant 0 : i32
    return %c0_i32, %c0_i32_0 : i32, i32
  }
  func.func @transform_2(%arg0: i32) -> (i32, i32) {
    %c0_i32 = arith.constant 0 : i32
    %c0_i32_0 = arith.constant 0 : i32
    %c0_i32_1 = arith.constant 0 : i32
    return %c0_i32, %c0_i32_0 : i32, i32
  }
  func.func @transform_3(%arg0: i32) -> (i32, i32) {
    %c0_i32 = arith.constant 0 : i32
    %c0_i32_0 = arith.constant 0 : i32
    %c0_i32_1 = arith.constant 0 : i32
    return %c0_i32, %c0_i32_0 : i32, i32
  }
  func.func @transform_4(%arg0: i32) -> (i32, i32) {
    %c0_i32 = arith.constant 0 : i32
    %c0_i32_0 = arith.constant 0 : i32
    %c0_i32_1 = arith.constant 0 : i32
    return %c0_i32, %c0_i32_0 : i32, i32
  }
  func.func @transform_5(%arg0: i32) -> (i32, i32) {
    %c0_i32 = arith.constant 0 : i32
    %c0_i32_0 = arith.constant 0 : i32
    %c0_i32_1 = arith.constant 0 : i32
    return %c0_i32, %c0_i32_0 : i32, i32
  }
  func.func @transform_6(%arg0: i32) -> (i32, i32) {
    %c0_i32 = arith.constant 0 : i32
    %c0_i32_0 = arith.constant 0 : i32
    %c0_i32_1 = arith.constant 0 : i32
    return %c0_i32, %c0_i32_0 : i32, i32
  }
  func.func @transform_7(%arg0: i32) -> (i32, i32) {
    %c0_i32 = arith.constant 0 : i32
    %c0_i32_0 = arith.constant 0 : i32
    %c0_i32_1 = arith.constant 0 : i32
    return %c0_i32, %c0_i32_0 : i32, i32
  }
  func.func @transform_8(%arg0: i32) -> (i32, i32) {
    %c0_i32 = arith.constant 0 : i32
    %c0_i32_0 = arith.constant 0 : i32
    %c0_i32_1 = arith.constant 0 : i32
    return %c0_i32, %c0_i32_0 : i32, i32
  }
  func.func @transform_9(%arg0: i32) -> (i32, i32) {
    %c0_i32 = arith.constant 0 : i32
    %c0_i32_0 = arith.constant 0 : i32
    return %arg0, %c0_i32 : i32, i32
  }
}

</mosaic_0001>

<bundles_post_ra>
// kernel: classifier_forward.1
= control target key start
LH: loop header
LB: loop body
LE: loop exit
PB: predicated region body
PF: predicated region fallthrough
CT: control target
= control target key end

     0   :  { %14 = vsyncpa [#allocation3], 0  ;;  %s681_s30 = smov [#allocation2]   ;;  %s868_s0 = inlined_call_operand.vmem [shape: f32[16,64], index: 0, kind: input, shape index: {}]   ;;  %s869_s1 = inlined_call_operand.vmem [shape: bf16[64,128], index: 1, kind: input, shape index: {}]   ;;  %s870_s2 = inlined_call_operand.vmem [shape: f32[1,128], index: 2, kind: input, shape index: {}]   ;;  %s871_s3 = inlined_call_operand.vmem [shape: bf16[128,128], index: 3, kind: input, shape index: {}]   ;;  %s872_s4 = inlined_call_operand.vmem [shape: f32[1,128], index: 4, kind: input, shape index: {}]   ;;  %s873_s5 = inlined_call_operand.hbm [shape: bf16[128,128], index: 5, kind: input, shape index: {}]   ;;  %s874_s6 = inlined_call_operand.vmem [shape: f32[1,128], index: 6, kind: input, shape index: {}]   ;;  %s875_s7 = inlined_call_operand.vmem [shape: bf16[128,16], index: 7, kind: input, shape index: {}]   ;;  %s876_s8 = inlined_call_operand.vmem [shape: f32[1,16], index: 8, kind: input, shape index: {}]   ;;  %s877_s9 = inlined_call_operand.vmem [shape: f32[16,16], index: 9, kind: output, shape index: {}]  }
   0x1   :  { %s30_s10 = sshll.u32 %s681_s30, 4  ;;  %s657_s13 = scalar_lea.hbm %s873_s5, 1024  ;;  %s31_s10 = int_to_ptr.vmem [resolvable:$true] %s30_s10 }
   0x2   :  { %p658_p0 = scmp.ne.s32.totalorder %s873_s5, %s657_s13  ;;  %p661_p1 = scmp.lt.u32.totalorder %s657_s13, %s873_s5 }
   0x4   :  { %p663_p2 = pnand %p661_p1, %p658_p0 }
   0x6   :  { %666 = shalt.err (!%p663_p2)
}
   0x7   :  { %s667_s18 = scalar_lea.vmem %s31_s10, 1024  ;;  %p672_p4 = scmp.lt.s32.totalorder %s31_s10, %s31_s10 }
   0x8   :  { %p668_p3 = scmp.ne.s32.totalorder %s31_s10, %s667_s18  ;;  %p673_p5 = scmp.lt.s32.totalorder %s667_s18, %s667_s18 }
   0xa   :  { %p674_p6 = por %p673_p5, %p672_p4 }
   0xc   :  { %p675_p7 = pnand %p674_p6, %p668_p3 }
   0xe   :  { %678 = shalt.err (!%p675_p7)
}
   0xf   :  { %s682_s19 = smov 64   ;;  %s683_s20 = smov 4  }
  0x10   :  { %36 = dma.hbm_to_vmem [thread:$0]  %s873_s5, 1024, %s31_s10, [#allocation3], %s682_s19, %s682_s19, %s683_s20  }
  0x11   :  { %679 = dma.done.wait [#allocation3], 1024  }
  0x12   :  { %680 = vsyncadd [#allocation3], 4294966272  ;;  %v684_v0 = vmov 0.0   ;;  %vm685_vm0 = vmmov 0   ;;  %v629_v1 = vld [vmem:[%s869_s1] sm:$0xff]   ;;  %v630_v2 = vld [vmem:[%s869_s1 + $0x8] sm:$0xff]  }
  0x13   :  { %552 = vmatprep.subr.bf16.mxu0 %v684_v0  ;;  %560 = vmatprep.mubr.msk.bf16.mxu0 %vm685_vm0, %v684_v0  ;;  %v633_v3 = vld [vmem:[%s871_s3] sm:$0xff]   ;;  %v631_v4 = vld [vmem:[%s869_s1 + $0x10] sm:$0xff]   ;;  %v634_v5 = vld [vmem:[%s871_s3 + $0x8] sm:$0xff]   ;;  %vm89_vm1 = vcmask 523264   ;;  %vm479_vm2 = vcmask 130048  }
  0x14   :  { %564 = vmatprep.subr.bf16.mxu1 %v684_v0  ;;  %580 = vmatprep.mubr.msk.bf16.mxu1 %vm685_vm0, %v684_v0  ;;  %v632_v6 = vld [vmem:[%s869_s1 + $0x18] sm:$0xff]   ;;  %v47_v7 = vld [vmem:[%s868_s0] sm:$0xff]  ;;  %v48_v8 = vld [vmem:[%s868_s0 + $0x8] sm:$0xff] }
  0x15   :  { %553 = vmatpush3.bf16.msra.mxu0 %v629_v1  ;;  %565 = vmatpush3.bf16.msra.mxu1 %v633_v3  ;;  %v635_v9 = vld [vmem:[%s871_s3 + $0x10] sm:$0xff]   ;;  %v49_v10 = vpack.c.bf16 %v48_v8, %v47_v7  ;;  %v636_v11 = vld [vmem:[%s871_s3 + $0x18] sm:$0xff]   ;;  %v637_v12 = vld [vmem:[%s871_s3 + $0x20] sm:$0xff]  }
  0x16   :  { %554 = vmatprep.subr.bf16.mxu0 %v684_v0  ;;  %566 = vmatprep.subr.bf16.mxu1 %v684_v0  ;;  %v638_v13 = vld [vmem:[%s871_s3 + $0x28] sm:$0xff]   ;;  %v639_v14 = vld [vmem:[%s871_s3 + $0x30] sm:$0xff]   ;;  %v640_v15 = vld [vmem:[%s871_s3 + $0x38] sm:$0xff]  }
  0x17   :  { %v641_v16 = vld [vmem:[#allocation2] sm:$0xff]   ;;  %v642_v17 = vld [vmem:[#allocation2 + $0x8] sm:$0xff]   ;;  %v643_v18 = vld [vmem:[#allocation2 + $0x10] sm:$0xff]  }
  0x18   :  { %v644_v19 = vld [vmem:[#allocation2 + $0x18] sm:$0xff]   ;;  %v645_v20 = vld [vmem:[#allocation2 + $0x20] sm:$0xff]   ;;  %v646_v21 = vld [vmem:[#allocation2 + $0x28] sm:$0xff]  }
  0x19   :  { %555 = vmatpush3.bf16.msra.mxu0 %v630_v2  ;;  %567 = vmatpush3.bf16.msra.mxu1 %v634_v5  ;;  %v487_v22 = vld [vmem:[%s870_s2] ss:$0 sm:$0xff]  ;;  %v647_v32 = vld [vmem:[#allocation2 + $0x30] sm:$0xff]   ;;  %v648_v33 = vld [vmem:[#allocation2 + $0x38] sm:$0xff]  }
  0x1a   :  { %556 = vmatprep.subr.bf16.mxu0 %v684_v0  ;;  %568 = vmatprep.subr.bf16.mxu1 %v684_v0  ;;  %v649_v34 = vld [vmem:[%s875_s7] sm:$0xff]   ;;  %v650_v35 = vld [vmem:[%s875_s7 + $0x8] sm:$0xff]   ;;  %v651_v36 = vld [vmem:[%s875_s7 + $0x10] sm:$0xff]  }
  0x1b   :  { %v652_v37 = vld [vmem:[%s875_s7 + $0x18] sm:$0xff]   ;;  %v653_v38 = vld [vmem:[%s875_s7 + $0x20] sm:$0xff]   ;;  %v654_v39 = vld [vmem:[%s875_s7 + $0x28] sm:$0xff]  }
  0x1c   :  { %v493_v40 = vld [vmem:[%s872_s4] ss:$0 sm:$0xff]  ;;  %v655_v50 = vld [vmem:[%s875_s7 + $0x30] sm:$0xff]   ;;  %v656_v51 = vld [vmem:[%s875_s7 + $0x38] sm:$0xff]  }
  0x1d   :  { %557 = vmatpush3.bf16.msra.mxu0 %v631_v4  ;;  %569 = vmatpush3.bf16.msra.mxu1 %v635_v9  ;;  %v502_v52 = vld [vmem:[%s874_s6] ss:$0 sm:$0xff] }
  0x1e   :  { %558 = vmatprep.subr.bf16.mxu0 %v684_v0  ;;  %570 = vmatprep.subr.bf16.mxu1 %v684_v0  ;;  %v511_v62 = vld [vmem:[%s876_s8] ss:$0 sm:$0xff] }
  0x21   :  { %559 = vmatpush3.bf16.msra.mxu0 %v632_v6  ;;  %571 = vmatpush3.bf16.msra.mxu1 %v636_v11 }
  0x22   :  { %584 = vmatprep.subr.bf16.mxu0 %v684_v0  ;;  %572 = vmatprep.subr.bf16.mxu1 %v684_v0 }
  0x24   :  { %561 = vmatmul.mubr.msk.bf16.vlgmr.msra.gmra.mrb[0].mxu0 %vm89_vm1, %v49_v10 }
  0x25   :  { %600 = vmatprep.mubr.msk.bf16.mxu0 %vm685_vm0, %v684_v0  ;;  %573 = vmatpush3.bf16.msra.mxu1 %v637_v12 }
  0x26   :  { %574 = vmatprep.subr.bf16.mxu1 %v684_v0  ;;  %585 = vmatpush3.bf16.msra.mxu0 %v641_v16 }
  0x27   :  { %586 = vmatprep.subr.bf16.mxu0 %v684_v0 }
  0x29   :  { %575 = vmatpush3.bf16.msra.mxu1 %v638_v13 }
  0x2a   :  { %576 = vmatprep.subr.bf16.mxu1 %v684_v0  ;;  %587 = vmatpush3.bf16.msra.mxu0 %v642_v17 }
  0x2b   :  { %588 = vmatprep.subr.bf16.mxu0 %v684_v0 }
  0x2d   :  { %577 = vmatpush3.bf16.msra.mxu1 %v639_v14 }
  0x2e   :  { %578 = vmatprep.subr.bf16.mxu1 %v684_v0  ;;  %589 = vmatpush3.bf16.msra.mxu0 %v643_v18 }
  0x2f   :  { %590 = vmatprep.subr.bf16.mxu0 %v684_v0 }
  0x31   :  { %579 = vmatpush3.bf16.msra.mxu1 %v640_v15 }
  0x32   :  { %604 = vmatprep.subr.bf16.mxu1 %v684_v0  ;;  %591 = vmatpush3.bf16.msra.mxu0 %v644_v19 }
  0x33   :  { %592 = vmatprep.subr.bf16.mxu0 %v684_v0 }
  0x36   :  { %593 = vmatpush3.bf16.msra.mxu0 %v645_v20 }
  0x37   :  { %594 = vmatprep.subr.bf16.mxu0 %v684_v0 }
  0x3a   :  { %595 = vmatpush3.bf16.msra.mxu0 %v646_v21 }
  0x3b   :  { %596 = vmatprep.subr.bf16.mxu0 %v684_v0 }
  0x3e   :  { %597 = vmatpush3.bf16.msra.mxu0 %v647_v32 }
  0x3f   :  { %598 = vmatprep.subr.bf16.mxu0 %v684_v0 }
  0x42   :  { %599 = vmatpush3.bf16.msra.mxu0 %v648_v33 }
  0xf7   :  { %v127_v23 = vpop.f32.mrb[0].mxu0 }
  0xf8   :  { %v128_v24 = vadd.f32 %v487_v22, %v127_v23  ;;  %v562_v25 = vpop.f32.mrb[1].mxu0 }
  0xf9   :  { %v130_v26 = vpop.f32.mrb[2].mxu0 }
  0xfa   :  { %v131_v27 = vadd.f32 %v487_v22, %v130_v26  ;;  %v563_v28 = vpop.f32.mrb[3].mxu0  ;;  %v134_v29 = vmax.f32 %v128_v24, 0.0 }
  0xfc   :  { %v135_v30 = vmax.f32 %v131_v27, 0.0 }
  0xfe   :  { %v136_v31 = vpack.c.bf16 %v135_v30, %v134_v29 }
 0x100   :  { %581 = vmatmul.mubr.bf16.vlgmr.msra.gmra.mrb[0].mxu1 %v136_v31 }
 0x101   :  { %620 = vmatprep.mubr.msk.bf16.mxu1 %vm685_vm0, %v684_v0  ;;  %605 = vmatpush3.bf16.msra.mxu1 %v649_v34 }
 0x102   :  { %606 = vmatprep.subr.bf16.mxu1 %v684_v0 }
 0x105   :  { %607 = vmatpush3.bf16.msra.mxu1 %v650_v35 }
 0x106   :  { %608 = vmatprep.subr.bf16.mxu1 %v684_v0 }
 0x109   :  { %609 = vmatpush3.bf16.msra.mxu1 %v651_v36 }
 0x10a   :  { %610 = vmatprep.subr.bf16.mxu1 %v684_v0 }
 0x10d   :  { %611 = vmatpush3.bf16.msra.mxu1 %v652_v37 }
 0x10e   :  { %612 = vmatprep.subr.bf16.mxu1 %v684_v0 }
 0x111   :  { %613 = vmatpush3.bf16.msra.mxu1 %v653_v38 }
 0x112   :  { %614 = vmatprep.subr.bf16.mxu1 %v684_v0 }
 0x115   :  { %615 = vmatpush3.bf16.msra.mxu1 %v654_v39 }
 0x116   :  { %616 = vmatprep.subr.bf16.mxu1 %v684_v0 }
 0x119   :  { %617 = vmatpush3.bf16.msra.mxu1 %v655_v50 }
 0x11a   :  { %618 = vmatprep.subr.bf16.mxu1 %v684_v0 }
 0x11d   :  { %619 = vmatpush3.bf16.msra.mxu1 %v656_v51 }
 0x1d3   :  { %v242_v41 = vpop.f32.mrb[0].mxu1 }
 0x1d4   :  { %v243_v42 = vadd.f32 %v493_v40, %v242_v41  ;;  %v582_v43 = vpop.f32.mrb[1].mxu1 }
 0x1d5   :  { %v245_v44 = vpop.f32.mrb[2].mxu1 }
 0x1d6   :  { %v246_v45 = vadd.f32 %v493_v40, %v245_v44  ;;  %v583_v46 = vpop.f32.mrb[3].mxu1  ;;  %v249_v47 = vmax.f32 %v243_v42, 0.0 }
 0x1d8   :  { %v250_v48 = vmax.f32 %v246_v45, 0.0 }
 0x1da   :  { %v251_v49 = vpack.c.bf16 %v250_v48, %v249_v47 }
 0x1dc   :  { %601 = vmatmul.mubr.bf16.vlgmr.msra.gmra.mrb[4].mxu0 %v251_v49 }
 0x2af   :  { %v357_v53 = vpop.f32.mrb[4].mxu0 }
 0x2b0   :  { %v358_v54 = vadd.f32 %v502_v52, %v357_v53  ;;  %v602_v55 = vpop.f32.mrb[5].mxu0 }
 0x2b1   :  { %v360_v56 = vpop.f32.mrb[6].mxu0 }
 0x2b2   :  { %v361_v57 = vadd.f32 %v502_v52, %v360_v56  ;;  %v603_v58 = vpop.f32.mrb[7].mxu0  ;;  %v364_v59 = vmax.f32 %v358_v54, 0.0 }
 0x2b4   :  { %v365_v60 = vmax.f32 %v361_v57, 0.0 }
 0x2b6   :  { %v366_v61 = vpack.c.bf16 %v365_v60, %v364_v59 }
 0x2b8   :  { %621 = vmatmul.mubr.bf16.vlgmr.msra.gmra.mrb[4].mxu1 %v366_v61 }
 0x38b   :  { %v472_v63 = vpop.f32.mrb[4].mxu1 }
 0x38c   :  { %v473_v0 = vadd.f32 %v511_v62, %v472_v63  ;;  %v622_v1 = vpop.f32.mrb[5].mxu1 }
 0x38d   :  { %v475_v2 = vpop.f32.mrb[6].mxu1 }
 0x38e   :  { %480 = vst.msk [vmem:[%s877_s9] sm:$0xff] %vm479_vm2, %v473_v0  ;;  %v476_v3 = vadd.f32 %v511_v62, %v475_v2  ;;  %v623_v4 = vpop.f32.mrb[7].mxu1 }
 0x390   :  { %481 = vst.msk [vmem:[%s877_s9 + $0x8] sm:$0xff] %vm479_vm2, %v476_v3 }
 0x391   :  { %486 = vsyncpa [#allocation3], 1 }

</bundles_post_ra>
